<compile_context>
chip_gen: v5e
topology: v5e:2x2
jax: 0.10.0
libtpu: 0.0.40
codegen_flags: <defaults>
</compile_context>

<pallas_src>
import math

import jax
import jax.numpy as jnp
from jax.experimental import pallas as pl
from jax.experimental.pallas import tpu as pltpu

_LANES = 128
_MAX_TILE_ROWS = 512  # (512, 128) f32 tile = 256 KiB; safe on v5e/v6e/v7x VMEM


def _mse_sum_kernel(pred_ref, tgt_ref, out_ref):
    """Accumulate sum((pred - tgt)**2) of the current tile into out_ref[0, 0]."""
    @pl.when(pl.program_id(0) == 0)
    def _():
        out_ref[...] = jnp.zeros_like(out_ref)

    diff = pred_ref[...].astype(jnp.float32) - tgt_ref[...].astype(jnp.float32)
    out_ref[...] += jnp.sum(diff * diff)


def _mse_sum_pallas(pred_2d, tgt_2d, tile_rows):
    """Sum of squared differences of two (rows, 128) slabs via a tiled kernel."""
    rows, lanes = pred_2d.shape
    assert rows % tile_rows == 0 and lanes == _LANES
    grid = rows // tile_rows

    out = pl.pallas_call(
        _mse_sum_kernel,
        out_shape=jax.ShapeDtypeStruct((1, 1), jnp.float32),
        grid_spec=pltpu.PrefetchScalarGridSpec(
            num_scalar_prefetch=0,
            grid=(grid,),
            in_specs=[
                pl.BlockSpec((tile_rows, _LANES), lambda i: (i, 0)),
                pl.BlockSpec((tile_rows, _LANES), lambda i: (i, 0)),
            ],
            out_specs=pl.BlockSpec((1, 1), lambda i: (0, 0)),
        ),
        compiler_params=pltpu.CompilerParams(
            dimension_semantics=("arbitrary",),  # reduction axis (accumulator output)
        ),
    )(pred_2d, tgt_2d)
    return out[0, 0]


def regression_loss_forward(targets, *outputs, max_tile_rows=_MAX_TILE_ROWS):
    """JAX/Pallas equivalent of RegressionLoss.forward(targets, *outputs).

    Implements MSELoss (mean reduction) between outputs[0].squeeze() and
    targets.squeeze(); extra outputs are ignored, matching the PyTorch module.
    """
    preds = jnp.squeeze(outputs[0])
    tgts = jnp.squeeze(targets)
    preds, tgts = jnp.broadcast_arrays(preds, tgts)

    n = int(math.prod(preds.shape)) if preds.ndim > 0 else 1
    out_dtype = jnp.result_type(outputs[0].dtype, targets.dtype)

    # Flatten and zero-pad both operands to a lane-dense (rows, 128) slab whose
    # row count is an exact multiple of the tile height (zero padding in both
    # operands contributes nothing to the sum of squares).
    rows = max(1, -(-n // _LANES))
    tile_rows = min(max_tile_rows, -(-rows // 8) * 8)  # multiple of 8, capped
    padded_rows = -(-rows // tile_rows) * tile_rows
    total = padded_rows * _LANES

    pred_flat = jnp.pad(preds.reshape(-1), (0, total - n)).reshape(padded_rows, _LANES)
    tgt_flat = jnp.pad(tgts.reshape(-1), (0, total - n)).reshape(padded_rows, _LANES)

    sum_sq = _mse_sum_pallas(pred_flat, tgt_flat, tile_rows)
    loss = sum_sq / jnp.float32(n)
    return loss.astype(out_dtype)


if __name__ == "__main__":
    key = jax.random.PRNGKey(0)
    k1, k2, k3, k4 = jax.random.split(key, 4)

    # Case 1: classic regression head — model output (N, 1) vs targets (N,).
    preds = jax.random.normal(k1, (8, 1), dtype=jnp.float32)
    targets = jax.random.normal(k2, (8,), dtype=jnp.float32)
    loss = jax.block_until_ready(regression_loss_forward(targets, preds))
    ref = jnp.mean((jnp.squeeze(preds) - jnp.squeeze(targets)) ** 2)
    assert loss.shape == () and loss.dtype == jnp.float32
    assert jnp.allclose(loss, ref, rtol=1e-5, atol=1e-6)

    # Case 2: dense regression target (batch=2, channels=4, spatial=16x16),
    # forced onto a multi-step grid to exercise the accumulator path.
    preds2 = jax.random.normal(k3, (2, 4, 16, 16), dtype=jnp.float32)
    targets2 = jax.random.normal(k4, (2, 4, 16, 16), dtype=jnp.float32)
    loss2 = jax.block_until_ready(
        regression_loss_forward(targets2, preds2, max_tile_rows=8)
    )
    ref2 = jnp.mean((jnp.squeeze(preds2) - jnp.squeeze(targets2)) ** 2)
    assert jnp.allclose(loss2, ref2, rtol=1e-5, atol=1e-6)

    print("KERNEL_OK")
</pallas_src>

<mosaic_0001>
module attributes {stable_mosaic.version = 11 : i64} {
  func.func @_mse_sum_kernel(%arg0: i32, %arg1: memref<8x128xf32, #tpu.memory_space<vmem>>, %arg2: memref<8x128xf32, #tpu.memory_space<vmem>>, %arg3: memref<1x1xf32, #tpu.memory_space<vmem>>) attributes {dimension_semantics = [#tpu.dimension_semantics<arbitrary>], iteration_bounds = array<i64: 1>, scalar_prefetch = 0 : i64, scratch_operands = 0 : i64, tpu.core_type = #tpu.core_type<tc>, window_params = [{transform_indices = @transform_0, window_bounds = array<i64: 8, 128>}, {transform_indices = @transform_1, window_bounds = array<i64: 8, 128>}, {pipeline_mode = #tpu.pipeline_mode<synchronous>, transform_indices = @transform_2, window_bounds = array<i64: 1, 1>}]} {
    %c0_i32 = arith.constant 0 : i32
    %0 = arith.cmpi eq, %arg0, %c0_i32 : i32
    %1 = arith.extui %0 : i1 to i32
    %c0_i32_0 = arith.constant 0 : i32
    %2 = arith.cmpi ne, %1, %c0_i32_0 : i32
    scf.if %2 {
      %cst_8 = arith.constant 0.000000e+00 : f32
      %15 = vector.broadcast %cst_8 : f32 to vector<1x1xf32>
      %c0_9 = arith.constant 0 : index
      %c0_10 = arith.constant 0 : index
      %16 = vector.load %arg3[%c0_9, %c0_10] : memref<1x1xf32, #tpu.memory_space<vmem>>, vector<1x1xf32>
      tpu.vector_store %arg3[%c0_9, %c0_10], %15 {strides = array<i32>} : memref<1x1xf32, #tpu.memory_space<vmem>>, vector<1x1xf32>,
    } else {
    }
    %c0 = arith.constant 0 : index
    %c0_1 = arith.constant 0 : index
    %3 = vector.load %arg1[%c0, %c0_1] : memref<8x128xf32, #tpu.memory_space<vmem>>, vector<8x128xf32>
    %c0_2 = arith.constant 0 : index
    %c0_3 = arith.constant 0 : index
    %4 = vector.load %arg2[%c0_2, %c0_3] : memref<8x128xf32, #tpu.memory_space<vmem>>, vector<8x128xf32>
    %5 = arith.subf %3, %4 : vector<8x128xf32>
    %c0_4 = arith.constant 0 : index
    %c0_5 = arith.constant 0 : index
    %6 = vector.load %arg3[%c0_4, %c0_5] : memref<1x1xf32, #tpu.memory_space<vmem>>, vector<1x1xf32>
    %7 = arith.mulf %5, %5 : vector<8x128xf32>
    %8 = vector.shape_cast %7 : vector<8x128xf32> to vector<1x8x128xf32>
    %cst = arith.constant dense<0.000000e+00> : vector<1xf32>
    %9 = vector.multi_reduction <add>, %8, %cst [1, 2] : vector<1x8x128xf32> to vector<1xf32>
    %10 = vector.shape_cast %9 : vector<1xf32> to vector<1x1x1xf32>
    %11 = vector.extract %10[0, 0, 0] : f32 from vector<1x1x1xf32>
    %12 = vector.broadcast %11 : f32 to vector<1x1xf32>
    %13 = arith.addf %6, %12 : vector<1x1xf32>
    %c0_6 = arith.constant 0 : index
    %c0_7 = arith.constant 0 : index
    %14 = vector.load %arg3[%c0_6, %c0_7] : memref<1x1xf32, #tpu.memory_space<vmem>>, vector<1x1xf32>
    tpu.vector_store %arg3[%c0_6, %c0_7], %13 {strides = array<i32>} : memref<1x1xf32, #tpu.memory_space<vmem>>, vector<1x1xf32>,
    return
  }
  func.func @transform_0(%arg0: i32) -> (i32, i32) {
    %c0_i32 = arith.constant 0 : i32
    %c0_i32_0 = arith.constant 0 : i32
    return %arg0, %c0_i32 : i32, i32
  }
  func.func @transform_1(%arg0: i32) -> (i32, i32) {
    %c0_i32 = arith.constant 0 : i32
    %c0_i32_0 = arith.constant 0 : i32
    return %arg0, %c0_i32 : i32, i32
  }
  func.func @transform_2(%arg0: i32) -> (i32, i32) {
    %c0_i32 = arith.constant 0 : i32
    %c0_i32_0 = arith.constant 0 : i32
    %c0_i32_1 = arith.constant 0 : i32
    return %c0_i32, %c0_i32_0 : i32, i32
  }
}

</mosaic_0001>

<bundles_post_ra>
// kernel: tpu_custom_call.1
= control target key start
LH: loop header
LB: loop body
LE: loop exit
PB: predicated region body
PF: predicated region fallthrough
CT: control target
= control target key end

     0   :  { %7 = vsyncpa [#allocation3], 0  ;;  %s196_s0 = inlined_call_operand.hbm [shape: f32[8,128], index: 0, kind: input, shape index: {}]   ;;  %s197_s1 = inlined_call_operand.hbm [shape: f32[8,128], index: 1, kind: input, shape index: {}]   ;;  %s198_s2 = inlined_call_operand.hbm [shape: f32[1,1], index: 2, kind: output, shape index: {}]  }
   0x1   :  { %8 = vsyncpa [#allocation6], 0 }
   0x2   :  { %9 = vsyncpa [#allocation4], 0  ;;  %s15_s11 = sshll.u32 %s196_s0, 4  ;;  %s166_s12 = smov [#allocation2]   ;;  %s16_s11 = int_to_ptr.hbm [resolvable:$true] %s15_s11 }
   0x3   :  { %s17_s13 = sshll.u32 %s166_s12, 4  ;;  %s26_s16 = sshll.u32 %s197_s1, 4  ;;  %s18_s13 = int_to_ptr.vmem [resolvable:$true] %s17_s13  ;;  %s27_s16 = int_to_ptr.hbm [resolvable:$true] %s26_s16 }
   0x4   :  { %20 = dma.hbm_to_vmem [thread:$0]  %s16_s11, 128, %s18_s13, [#allocation3]  }
   0x5   :  { %s167_s17 = smov [#allocation5]  }
   0x6   :  { %s28_s18 = sshll.u32 %s167_s17, 4  ;;  %s29_s18 = int_to_ptr.vmem [resolvable:$true] %s28_s18 }
   0x7   :  { %31 = dma.hbm_to_vmem [thread:$0]  %s27_s16, 128, %s29_s18, [#allocation6]  }
   0x8   :  { %160 = dma.done.wait [#allocation3], 128  }
   0x9   :  { %161 = vsyncadd [#allocation3], 4294967168 }
   0xa   :  { %162 = dma.done.wait [#allocation6], 128  }
   0xb   :  { %163 = vsyncadd [#allocation6], 4294967168  ;;  %vm44_vm0 = vcmask 0   ;;  %v168_v0 = vmov 0.0   ;;  %v46_v1 = vld [vmem:[#allocation2] sm:$0xff]  ;;  %v47_v2 = vld [vmem:[#allocation5] sm:$0xff] }
   0xc   :  { %45 = vst.msk [vmem:[#allocation7] sm:$0x1] %vm44_vm0, %v168_v0  ;;  %v48_v3 = vsub.f32 %v46_v1, %v47_v2  ;;  %s169_s0 = smov [#allocation7]   ;;  %s71_s21 = sshll.u32 %s198_s2, 4  ;;  %s72_s21 = int_to_ptr.hbm [resolvable:$true] %s71_s21 }
   0xd   :  { %s69_s1 = sshll.u32 %s169_s0, 4  ;;  %s70_s1 = int_to_ptr.vmem [resolvable:$true] %s69_s1 }
   0xe   :  { %v50_v4 = vmul.f32 %v48_v3, %v48_v3 }
  0x10   :  { %51 = vadd.xlane.f32.xlu0 %v50_v4 }
  0x13   :  { %v49_v12 = vld [vmem:[#allocation7] sm:$0x1] }
  0x83   :  { %v52_v5 = vpop.xlane.xlu0 %51 }
  0x84   :  { %v53_v6 = vrot.slane %v52_v5, 4 }
  0x86   :  { %v54_v7 = vadd.f32 %v53_v6, %v52_v5 }
  0x88   :  { %v55_v8 = vrot.slane %v54_v7, 2 }
  0x8a   :  { %v56_v9 = vadd.f32 %v55_v8, %v54_v7 }
  0x8c   :  { %v57_v10 = vrot.slane %v56_v9, 1 }
  0x8e   :  { %v58_v11 = vadd.f32 %v57_v10, %v56_v9 }
  0x90   :  { %82 = vpush %v58_v11 }
  0xc1   :  { %s83_s22 = spop %82 }
  0xc2   :  { %v60_v13 = vstv %s83_s22 }
  0xc3   :  { %v61_v14 = vadd.f32 %v60_v13, %v49_v12 }
  0xc5   :  { %63 = vst.msk [vmem:[#allocation7] sm:$0x1] %vm44_vm0, %v61_v14 }
  0xc6   :  { %74 = dma.vmem_to_hbm [thread:$0]  %s70_s1, 16, %s72_s21, [#allocation4]  }
  0xc7   :  { %164 = dma.done.wait [#allocation4], 16  }
  0xc8   :  { %165 = vsyncadd [#allocation4], 4294967280 }
  0xc9   :  { %79 = vsyncpa [#allocation3], 1 }
  0xca   :  { %80 = vsyncpa [#allocation6], 1 }
  0xcb   :  { %81 = vsyncpa [#allocation4], 1 }

</bundles_post_ra>
